<compile_context>
chip_gen: v5e
topology: v5e:2x2
jax: 0.10.0
libtpu: 0.0.40
codegen_flags: <defaults>
</compile_context>

<pallas_src>
import jax
import jax.numpy as jnp
import numpy as np
from jax.experimental import pallas as pl
from jax.experimental.pallas import tpu as pltpu


def _round_up(x, m):
    return ((x + m - 1) // m) * m


def _posterior_kernel(feats_ref, mask_ref, sel_ref,
                      w1_ref, b1_ref, w2_ref, b2_ref, wq_ref, bq_ref,
                      out_ref):
    bt, s_pad, f_pad = feats_ref.shape
    h_pad = w1_ref.shape[1]
    t_pad = sel_ref.shape[1]

    # ---- FFEncoder: flatten (Bt, S, F) -> (Bt*S, F) so the MXU sees many rows ----
    x = feats_ref[...].reshape(bt * s_pad, f_pad)                       # bf16
    h = jnp.dot(x, w1_ref[...], preferred_element_type=jnp.float32) + b1_ref[...]
    h = jax.nn.gelu(h)                                                  # f32 (EUP/VPU)
    enc = jnp.dot(h.astype(jnp.bfloat16), w2_ref[...],
                  preferred_element_type=jnp.float32) + b2_ref[...]     # (Bt*S, H) f32
    enc3 = enc.reshape(bt, s_pad, h_pad)
    enc3_bf = enc3.astype(jnp.bfloat16)

    # ---- Gather previously selected review states (one-hot matmul; S is small) ----
    sel = jnp.clip(sel_ref[...], 0, s_pad - 1)                          # (Bt, T, 1) i32
    col = jax.lax.broadcasted_iota(jnp.int32, (bt, t_pad, s_pad), 2)    # (Bt, T, S)
    onehot = (col == sel).astype(jnp.bfloat16)                          # (Bt, T, S)
    gathered = jax.lax.dot_general(
        onehot, enc3_bf,
        dimension_numbers=(((2,), (1,)), ((0,), (0,))),
        preferred_element_type=jnp.float32)                             # (Bt, T, H)

    # ---- LinearARDecoder projection (flattened so MXU sees Bt*T rows) ----
    q = jnp.dot(gathered.reshape(bt * t_pad, h_pad).astype(jnp.bfloat16),
                wq_ref[...], preferred_element_type=jnp.float32) + bq_ref[...]
    q3 = q.reshape(bt, t_pad, h_pad).astype(jnp.bfloat16)

    # ---- Scores: contract over H directly (no enc.T materialization) ----
    logits = jax.lax.dot_general(
        q3, enc3_bf,
        dimension_numbers=(((2,), (2,)), ((0,), (0,))),
        preferred_element_type=jnp.float32)                             # (Bt, T, S) f32
    logits = jnp.where(mask_ref[...] > 0.0, logits, jnp.float32(-1e9))
    out_ref[...] = logits


def posterior_forward(feats, feats_mask, prev_sel_indxs, params, batch_tile=None):
    """feats: (B,S,F) f32; feats_mask: (B,1,S) f32 (1=valid); prev_sel_indxs: (B,T,1) i32."""
    B, S, F = feats.shape
    T = prev_sel_indxs.shape[1]
    H = params["w1"].shape[1]

    # Lane/sublane-friendly padded sizes.
    S_pad = _round_up(S, 128)      # lane dim of logits / mask
    F_pad = _round_up(F, 128)
    H_pad = _round_up(H, 128)
    T_pad = _round_up(T, 8)

    # Batch tiling: >= 2 grid steps when B >= 2 keeps both v7x TensorCores busy;
    # larger batch_tile amortizes per-step overhead further for big B.
    if batch_tile is None:
        batch_tile = max(1, (B + 1) // 2)
    num_tiles = -(-B // batch_tile)
    B_pad = num_tiles * batch_tile

    def pad_to(x, shape):
        widths = [(0, t - s) for s, t in zip(x.shape, shape)]
        return jnp.pad(x, widths)

    feats_p = pad_to(feats, (B_pad, S_pad, F_pad)).astype(jnp.bfloat16)
    mask_p = pad_to(feats_mask, (B_pad, 1, S_pad)).astype(jnp.float32)   # pads -> 0 -> masked
    sel_p = pad_to(prev_sel_indxs, (B_pad, T_pad, 1)).astype(jnp.int32)

    w1 = pad_to(params["w1"], (F_pad, H_pad)).astype(jnp.bfloat16)
    b1 = pad_to(params["b1"], (1, H_pad)).astype(jnp.float32)
    w2 = pad_to(params["w2"], (H_pad, H_pad)).astype(jnp.bfloat16)
    b2 = pad_to(params["b2"], (1, H_pad)).astype(jnp.float32)
    wq = pad_to(params["wq"], (H_pad, H_pad)).astype(jnp.bfloat16)
    bq = pad_to(params["bq"], (1, H_pad)).astype(jnp.float32)

    resident = lambda shape: pl.BlockSpec(shape, lambda b: (0, 0))  # constant index_map

    grid_spec = pltpu.PrefetchScalarGridSpec(
        num_scalar_prefetch=0,
        grid=(num_tiles,),
        in_specs=[
            pl.BlockSpec((batch_tile, S_pad, F_pad), lambda b: (b, 0, 0)),   # feats
            pl.BlockSpec((batch_tile, 1, S_pad), lambda b: (b, 0, 0)),       # mask
            pl.BlockSpec((batch_tile, T_pad, 1), lambda b: (b, 0, 0)),       # prev_sel_indxs
            resident((F_pad, H_pad)),                                        # w1
            resident((1, H_pad)),                                            # b1
            resident((H_pad, H_pad)),                                        # w2
            resident((1, H_pad)),                                            # b2
            resident((H_pad, H_pad)),                                        # wq
            resident((1, H_pad)),                                            # bq
        ],
        out_specs=pl.BlockSpec((batch_tile, T_pad, S_pad), lambda b: (b, 0, 0)),
    )

    out_padded = pl.pallas_call(
        _posterior_kernel,
        out_shape=jax.ShapeDtypeStruct((B_pad, T_pad, S_pad), jnp.float32),
        grid_spec=grid_spec,
        compiler_params=pltpu.CompilerParams(dimension_semantics=("parallel",)),
    )(feats_p, mask_p, sel_p, w1, b1, w2, b2, wq, bq)

    return out_padded[:B, :T, :S]


def posterior_reference(feats, feats_mask, prev_sel_indxs, params):
    """Pure-JAX reference with matching bf16 matmul operands / f32 accumulation."""
    bf = jnp.bfloat16
    h = jnp.dot(feats.astype(bf), params["w1"].astype(bf),
                preferred_element_type=jnp.float32) + params["b1"]
    h = jax.nn.gelu(h)
    enc = jnp.dot(h.astype(bf), params["w2"].astype(bf),
                  preferred_element_type=jnp.float32) + params["b2"]          # (B,S,H)
    gathered = jax.vmap(lambda e, s: e[s[:, 0]])(enc, prev_sel_indxs)         # (B,T,H)
    q = jnp.dot(gathered.astype(bf), params["wq"].astype(bf),
                preferred_element_type=jnp.float32) + params["bq"]            # (B,T,H)
    logits = jnp.einsum("bth,bsh->bts", q.astype(bf), enc.astype(bf),
                        preferred_element_type=jnp.float32)                   # (B,T,S)
    return jnp.where(feats_mask > 0.0, logits, jnp.float32(-1e9))


if __name__ == "__main__":
    B, S, F, H, T = 2, 16, 32, 32, 8   # batch, #reviews, feat dim, hidden, decode steps

    key = jax.random.PRNGKey(0)
    k_feats, k_sel, k_w1, k_w2, k_wq = jax.random.split(key, 5)

    feats = jax.random.normal(k_feats, (B, S, F), dtype=jnp.float32)

    # mask: first batch fully valid, second batch has trailing padded reviews
    mask = jnp.ones((B, 1, S), dtype=jnp.float32)
    mask = mask.at[1, 0, S - 4:].set(0.0)

    prev_sel_indxs = jax.random.randint(k_sel, (B, T, 1), 0, S, dtype=jnp.int32)

    params = {
        "w1": jax.random.normal(k_w1, (F, H), dtype=jnp.float32) * 0.1,
        "b1": jnp.zeros((1, H), dtype=jnp.float32),
        "w2": jax.random.normal(k_w2, (H, H), dtype=jnp.float32) * 0.1,
        "b2": jnp.zeros((1, H), dtype=jnp.float32),
        "wq": jax.random.normal(k_wq, (H, H), dtype=jnp.float32) * 0.1,
        "bq": jnp.zeros((1, H), dtype=jnp.float32),
    }

    out = posterior_forward(feats, mask, prev_sel_indxs, params)
    out = jax.block_until_ready(out)

    ref = jax.block_until_ready(posterior_reference(feats, mask, prev_sel_indxs, params))
    np.testing.assert_allclose(np.asarray(out), np.asarray(ref), rtol=1e-2, atol=1e-2)

    print("KERNEL_OK")
</pallas_src>

<mosaic_0001>
module attributes {stable_mosaic.version = 11 : i64} {
  func.func @_posterior_kernel(%arg0: i32, %arg1: memref<1x128x128xbf16, #tpu.memory_space<vmem>>, %arg2: memref<1x1x128xf32, #tpu.memory_space<vmem>>, %arg3: memref<1x8x1xi32, #tpu.memory_space<vmem>>, %arg4: memref<128x128xbf16, #tpu.memory_space<vmem>>, %arg5: memref<1x128xf32, #tpu.memory_space<vmem>>, %arg6: memref<128x128xbf16, #tpu.memory_space<vmem>>, %arg7: memref<1x128xf32, #tpu.memory_space<vmem>>, %arg8: memref<128x128xbf16, #tpu.memory_space<vmem>>, %arg9: memref<1x128xf32, #tpu.memory_space<vmem>>, %arg10: memref<1x8x128xf32, #tpu.memory_space<vmem>>) attributes {dimension_semantics = [#tpu.dimension_semantics<parallel>], iteration_bounds = array<i64: 2>, scalar_prefetch = 0 : i64, scratch_operands = 0 : i64, tpu.core_type = #tpu.core_type<tc>, window_params = [{transform_indices = @transform_0, window_bounds = array<i64: 1, 128, 128>}, {transform_indices = @transform_1, window_bounds = array<i64: 1, 1, 128>}, {transform_indices = @transform_2, window_bounds = array<i64: 1, 8, 1>}, {pipeline_mode = #tpu.pipeline_mode<synchronous>, transform_indices = @transform_3, window_bounds = array<i64: 128, 128>}, {pipeline_mode = #tpu.pipeline_mode<synchronous>, transform_indices = @transform_4, window_bounds = array<i64: 1, 128>}, {pipeline_mode = #tpu.pipeline_mode<synchronous>, transform_indices = @transform_5, window_bounds = array<i64: 128, 128>}, {pipeline_mode = #tpu.pipeline_mode<synchronous>, transform_indices = @transform_6, window_bounds = array<i64: 1, 128>}, {pipeline_mode = #tpu.pipeline_mode<synchronous>, transform_indices = @transform_7, window_bounds = array<i64: 128, 128>}, {pipeline_mode = #tpu.pipeline_mode<synchronous>, transform_indices = @transform_8, window_bounds = array<i64: 1, 128>}, {transform_indices = @transform_9, window_bounds = array<i64: 1, 8, 128>}]} {
    %c0 = arith.constant 0 : index
    %c0_0 = arith.constant 0 : index
    %c0_1 = arith.constant 0 : index
    %0 = vector.load %arg1[%c0, %c0_0, %c0_1] : memref<1x128x128xbf16, #tpu.memory_space<vmem>>, vector<1x128x128xbf16>
    %1 = vector.shape_cast %0 : vector<1x128x128xbf16> to vector<128x128xbf16>
    %c0_2 = arith.constant 0 : index
    %c0_3 = arith.constant 0 : index
    %2 = vector.load %arg4[%c0_2, %c0_3] : memref<128x128xbf16, #tpu.memory_space<vmem>>, vector<128x128xbf16>
    %cst = arith.constant dense<0.000000e+00> : vector<128x128xf32>
    %3 = tpu.matmul %1, %2, %cst {dimension_numbers = #tpu.dot_dimension_numbers<[1], [0], [0], [1], [0, 0, 1, 1], [], []>} : vector<128x128xbf16>, vector<128x128xbf16>, vector<128x128xf32> -> vector<128x128xf32>
    %c0_4 = arith.constant 0 : index
    %c0_5 = arith.constant 0 : index
    %4 = vector.load %arg5[%c0_4, %c0_5] : memref<1x128xf32, #tpu.memory_space<vmem>>, vector<1x128xf32>
    %5 = vector.broadcast %4 : vector<1x128xf32> to vector<128x128xf32>
    %6 = arith.addf %3, %5 : vector<128x128xf32>
    %7 = arith.mulf %6, %6 : vector<128x128xf32>
    %8 = arith.mulf %6, %7 : vector<128x128xf32>
    %cst_6 = arith.constant 4.471500e-02 : f32
    %9 = vector.broadcast %cst_6 : f32 to vector<128x128xf32>
    %10 = arith.mulf %9, %8 : vector<128x128xf32>
    %11 = arith.addf %6, %10 : vector<128x128xf32>
    %cst_7 = arith.constant 0.797884583 : f32
    %12 = vector.broadcast %cst_7 : f32 to vector<128x128xf32>
    %13 = arith.mulf %12, %11 : vector<128x128xf32>
    %14 = math.tanh %13 : vector<128x128xf32>
    %cst_8 = arith.constant 1.000000e+00 : f32
    %15 = vector.broadcast %cst_8 : f32 to vector<128x128xf32>
    %16 = arith.addf %15, %14 : vector<128x128xf32>
    %cst_9 = arith.constant 5.000000e-01 : f32
    %17 = vector.broadcast %cst_9 : f32 to vector<128x128xf32>
    %18 = arith.mulf %17, %16 : vector<128x128xf32>
    %19 = arith.mulf %6, %18 : vector<128x128xf32>
    %20 = arith.truncf %19 : vector<128x128xf32> to vector<128x128xbf16>
    %c0_10 = arith.constant 0 : index
    %c0_11 = arith.constant 0 : index
    %21 = vector.load %arg6[%c0_10, %c0_11] : memref<128x128xbf16, #tpu.memory_space<vmem>>, vector<128x128xbf16>
    %cst_12 = arith.constant dense<0.000000e+00> : vector<128x128xf32>
    %22 = tpu.matmul %20, %21, %cst_12 {dimension_numbers = #tpu.dot_dimension_numbers<[1], [0], [0], [1], [0, 0, 1, 1], [], []>} : vector<128x128xbf16>, vector<128x128xbf16>, vector<128x128xf32> -> vector<128x128xf32>
    %c0_13 = arith.constant 0 : index
    %c0_14 = arith.constant 0 : index
    %23 = vector.load %arg7[%c0_13, %c0_14] : memref<1x128xf32, #tpu.memory_space<vmem>>, vector<1x128xf32>
    %24 = vector.broadcast %23 : vector<1x128xf32> to vector<128x128xf32>
    %25 = arith.addf %22, %24 : vector<128x128xf32>
    %26 = vector.shape_cast %25 : vector<128x128xf32> to vector<1x128x128xf32>
    %27 = arith.truncf %26 : vector<1x128x128xf32> to vector<1x128x128xbf16>
    %c0_15 = arith.constant 0 : index
    %c0_16 = arith.constant 0 : index
    %c0_17 = arith.constant 0 : index
    %28 = vector.load %arg3[%c0_15, %c0_16, %c0_17] : memref<1x8x1xi32, #tpu.memory_space<vmem>>, vector<1x8x1xi32>
    %c0_i32 = arith.constant 0 : i32
    %c127_i32 = arith.constant 127 : i32
    %29 = vector.broadcast %c0_i32 : i32 to vector<1x8x1xi32>
    %30 = arith.maxsi %29, %28 : vector<1x8x1xi32>
    %31 = vector.broadcast %c127_i32 : i32 to vector<1x8x1xi32>
    %32 = arith.minsi %31, %30 : vector<1x8x1xi32>
    %33 = tpu.iota {dimensions = array<i32: 2>} : vector<1x8x128xi32>
    %34 = vector.broadcast %32 : vector<1x8x1xi32> to vector<1x8x128xi32>
    %35 = arith.cmpi eq, %33, %34 : vector<1x8x128xi32>
    %36 = arith.extui %35 : vector<1x8x128xi1> to vector<1x8x128xi32>
    %37 = arith.sitofp %36 : vector<1x8x128xi32> to vector<1x8x128xf32>
    %38 = arith.truncf %37 : vector<1x8x128xf32> to vector<1x8x128xbf16>
    %cst_18 = arith.constant dense<0.000000e+00> : vector<1x8x128xf32>
    %39 = tpu.matmul %38, %27, %cst_18 {dimension_numbers = #tpu.dot_dimension_numbers<[2], [1], [1], [2], [0, 0, 0, 1, 1, 2], [0], [0]>} : vector<1x8x128xbf16>, vector<1x128x128xbf16>, vector<1x8x128xf32> -> vector<1x8x128xf32>
    %40 = vector.shape_cast %39 : vector<1x8x128xf32> to vector<8x128xf32>
    %41 = arith.truncf %40 : vector<8x128xf32> to vector<8x128xbf16>
    %c0_19 = arith.constant 0 : index
    %c0_20 = arith.constant 0 : index
    %42 = vector.load %arg8[%c0_19, %c0_20] : memref<128x128xbf16, #tpu.memory_space<vmem>>, vector<128x128xbf16>
    %cst_21 = arith.constant dense<0.000000e+00> : vector<8x128xf32>
    %43 = tpu.matmul %41, %42, %cst_21 {dimension_numbers = #tpu.dot_dimension_numbers<[1], [0], [0], [1], [0, 0, 1, 1], [], []>} : vector<8x128xbf16>, vector<128x128xbf16>, vector<8x128xf32> -> vector<8x128xf32>
    %c0_22 = arith.constant 0 : index
    %c0_23 = arith.constant 0 : index
    %44 = vector.load %arg9[%c0_22, %c0_23] : memref<1x128xf32, #tpu.memory_space<vmem>>, vector<1x128xf32>
    %45 = vector.broadcast %44 : vector<1x128xf32> to vector<8x128xf32>
    %46 = arith.addf %43, %45 : vector<8x128xf32>
    %47 = vector.shape_cast %46 : vector<8x128xf32> to vector<1x8x128xf32>
    %48 = arith.truncf %47 : vector<1x8x128xf32> to vector<1x8x128xbf16>
    %cst_24 = arith.constant dense<0.000000e+00> : vector<1x8x128xf32>
    %49 = tpu.matmul %48, %27, %cst_24 {dimension_numbers = #tpu.dot_dimension_numbers<[2], [2], [1], [1], [0, 0, 0, 1, 1, 1], [0], [0]>} : vector<1x8x128xbf16>, vector<1x128x128xbf16>, vector<1x8x128xf32> -> vector<1x8x128xf32>
    %c0_25 = arith.constant 0 : index
    %c0_26 = arith.constant 0 : index
    %c0_27 = arith.constant 0 : index
    %50 = vector.load %arg2[%c0_25, %c0_26, %c0_27] : memref<1x1x128xf32, #tpu.memory_space<vmem>>, vector<1x1x128xf32>
    %cst_28 = arith.constant 0.000000e+00 : f32
    %51 = vector.broadcast %cst_28 : f32 to vector<1x1x128xf32>
    %52 = arith.cmpf ogt, %50, %51 : vector<1x1x128xf32>
    %cst_29 = arith.constant -1.000000e+09 : f32
    %53 = vector.shape_cast %52 : vector<1x1x128xi1> to vector<1x1x128xi1>
    %54 = vector.broadcast %53 : vector<1x1x128xi1> to vector<1x8x128xi1>
    %55 = vector.broadcast %cst_29 : f32 to vector<1x8x128xf32>
    %56 = arith.select %54, %49, %55 : vector<1x8x128xi1>, vector<1x8x128xf32>
    %c0_30 = arith.constant 0 : index
    %c0_31 = arith.constant 0 : index
    %c0_32 = arith.constant 0 : index
    %57 = vector.load %arg10[%c0_30, %c0_31, %c0_32] : memref<1x8x128xf32, #tpu.memory_space<vmem>>, vector<1x8x128xf32>
    tpu.vector_store %arg10[%c0_30, %c0_31, %c0_32], %56 {strides = array<i32>} : memref<1x8x128xf32, #tpu.memory_space<vmem>>, vector<1x8x128xf32>,
    return
  }
  func.func @transform_0(%arg0: i32) -> (i32, i32, i32) {
    %c0_i32 = arith.constant 0 : i32
    %c0_i32_0 = arith.constant 0 : i32
    %c0_i32_1 = arith.constant 0 : i32
    return %arg0, %c0_i32, %c0_i32_0 : i32, i32, i32
  }
  func.func @transform_1(%arg0: i32) -> (i32, i32, i32) {
    %c0_i32 = arith.constant 0 : i32
    %c0_i32_0 = arith.constant 0 : i32
    %c0_i32_1 = arith.constant 0 : i32
    return %arg0, %c0_i32, %c0_i32_0 : i32, i32, i32
  }
  func.func @transform_2(%arg0: i32) -> (i32, i32, i32) {
    %c0_i32 = arith.constant 0 : i32
    %c0_i32_0 = arith.constant 0 : i32
    %c0_i32_1 = arith.constant 0 : i32
    return %arg0, %c0_i32, %c0_i32_0 : i32, i32, i32
  }
  func.func @transform_3(%arg0: i32) -> (i32, i32) {
    %c0_i32 = arith.constant 0 : i32
    %c0_i32_0 = arith.constant 0 : i32
    %c0_i32_1 = arith.constant 0 : i32
    return %c0_i32, %c0_i32_0 : i32, i32
  }
  func.func @transform_4(%arg0: i32) -> (i32, i32) {
    %c0_i32 = arith.constant 0 : i32
    %c0_i32_0 = arith.constant 0 : i32
    %c0_i32_1 = arith.constant 0 : i32
    return %c0_i32, %c0_i32_0 : i32, i32
  }
  func.func @transform_5(%arg0: i32) -> (i32, i32) {
    %c0_i32 = arith.constant 0 : i32
    %c0_i32_0 = arith.constant 0 : i32
    %c0_i32_1 = arith.constant 0 : i32
    return %c0_i32, %c0_i32_0 : i32, i32
  }
  func.func @transform_6(%arg0: i32) -> (i32, i32) {
    %c0_i32 = arith.constant 0 : i32
    %c0_i32_0 = arith.constant 0 : i32
    %c0_i32_1 = arith.constant 0 : i32
    return %c0_i32, %c0_i32_0 : i32, i32
  }
  func.func @transform_7(%arg0: i32) -> (i32, i32) {
    %c0_i32 = arith.constant 0 : i32
    %c0_i32_0 = arith.constant 0 : i32
    %c0_i32_1 = arith.constant 0 : i32
    return %c0_i32, %c0_i32_0 : i32, i32
  }
  func.func @transform_8(%arg0: i32) -> (i32, i32) {
    %c0_i32 = arith.constant 0 : i32
    %c0_i32_0 = arith.constant 0 : i32
    %c0_i32_1 = arith.constant 0 : i32
    return %c0_i32, %c0_i32_0 : i32, i32
  }
  func.func @transform_9(%arg0: i32) -> (i32, i32, i32) {
    %c0_i32 = arith.constant 0 : i32
    %c0_i32_0 = arith.constant 0 : i32
    %c0_i32_1 = arith.constant 0 : i32
    return %arg0, %c0_i32, %c0_i32_0 : i32, i32, i32
  }
}

</mosaic_0001>

<bundles_post_ra>
// kernel: tpu_custom_call.1
= control target key start
LH: loop header
LB: loop body
LE: loop exit
PB: predicated region body
PF: predicated region fallthrough
CT: control target
= control target key end

     0   :  { %s2067_s0 = inlined_call_operand.hbm [shape: bf16[2,128,128], index: 0, kind: input, shape index: {}]   ;;  %s2068_s1 = inlined_call_operand.vmem [shape: f32[2,1,128], index: 1, kind: input, shape index: {}]   ;;  %s2069_s2 = inlined_call_operand.vmem [shape: s32[2,8,1], index: 2, kind: input, shape index: {}]   ;;  %s2070_s3 = inlined_call_operand.hbm [shape: bf16[128,128], index: 3, kind: input, shape index: {}]   ;;  %s2071_s4 = inlined_call_operand.vmem [shape: f32[1,128], index: 4, kind: input, shape index: {}]   ;;  %s2072_s5 = inlined_call_operand.hbm [shape: bf16[128,128], index: 5, kind: input, shape index: {}]   ;;  %s2073_s6 = inlined_call_operand.vmem [shape: f32[1,128], index: 6, kind: input, shape index: {}]   ;;  %s2074_s7 = inlined_call_operand.hbm [shape: bf16[128,128], index: 7, kind: input, shape index: {}]   ;;  %s2075_s8 = inlined_call_operand.vmem [shape: f32[1,128], index: 8, kind: input, shape index: {}]   ;;  %s2076_s9 = inlined_call_operand.hbm [shape: f32[2,8,128], index: 9, kind: output, shape index: {}]  }
   0x1   :  { %2079 = sst [smem:[#allocation15_spill]] %s2070_s3 }
   0x2   :  { %2080 = sst [smem:[#allocation16_spill]] %s2072_s5 }
   0x3   :  { %2081 = sst [smem:[#allocation17_spill]] %s2074_s7 }
   0x4   :  { %14 = vsyncpa [#allocation3], 0 }
   0x5   :  { %16 = vsyncpa [#allocation3 + $0x1], 0 }
   0x6   :  { %17 = vsyncpa [#allocation6], 0 }
   0x7   :  { %18 = vsyncpa [#allocation9], 0 }
   0x8   :  { %19 = vsyncpa [#allocation4], 0 }
   0x9   :  { %21 = vsyncpa [#allocation4 + $0x1], 0  ;;  %s1784_s30 = smov 0   ;;  %s1786_s10 = smov 0  }
   0xa   :  { %s1788_s11 = smov 0   ;;  %s1790_s12 = smov 0  }
   0xb LB: > { %s1805_s13 = sadd.s32 4294967295, %s1725_s12   ;;  %s1214_s14 = sadd.s32 4294967294, %s1725_s12   ;;  %s1725_s12 = sphi %s1790_s12, %s2097_s12   ;;  %s1721_s11 = sphi %s1788_s11, %s2096_s11   ;;  %s1717_s10 = sphi %s1786_s10, %s2095_s10   ;;  %s1713_s30 = sphi %s1784_s30, %s2094_s30  }
   0xc   : > { %p47_p0 = scmp.ne.s32.totalorder %s1717_s10, %s1713_s30  ;;  %p48_p1 = scmp.eq.s32.totalorder %s1805_s13, 0 }
   0xd   : > { %p249_p2 = scmp.eq.s32.totalorder %s1805_s13, 1  ;;  %p255_p3 = scmp.eq.s32.totalorder %s1214_s14, 1 }
   0xe   : > { %p1814_p4 = por %p48_p1, %p47_p0  ;;  %p1215_p5 = scmp.ge.s32.totalorder %s1725_s12, 1 }
   0xf   : > { %p1819_p6 = por %p255_p3, %p47_p0  ;;  %p262_p7 = scmp.lt.s32.totalorder %s1725_s12, 3 }
  0x10   : > { %s2084_s3 = sld [smem:[#allocation15_spill]]  ;;  %s1727_s21 = smov [#allocation5]  }
  0x11   : > { %p1827_p8 = pnand %p1215_p5, %p262_p7  ;;  %s275_s22 = sshll.u32 %s1727_s21, 4  ;;  %s276_s22 = int_to_ptr.vmem [resolvable:$true] %s275_s22 }
  0x12   : > { %s2087_s5 = sld [smem:[#allocation16_spill]]  ;;  %s2077_s27 = smov 64  }
  0x13   : > { %p1430_p9 = pneg %p1827_p8  ;;  %s2078_s28 = smov 4  }
  0x14   : > { %s1730_s29 = smov [#allocation7]   ;;  %s2088_s7 = sld [smem:[#allocation17_spill]] }
  0x15   : > { %p1835_p10 = pnand %p1430_p9, %p48_p1  ;;  %s292_s14 = sshll.u32 %s1730_s29, 4  ;;  %s293_s14 = int_to_ptr.vmem [resolvable:$true] %s292_s14 }
  0x16   : > { %s273_s19 = sshll.u32 %s2084_s3, 4  ;;  %s1857_s24 = sadd.s32 1, %s1725_s12   ;;  %s274_s19 = int_to_ptr.hbm [resolvable:$true] %s273_s19 }
  0x17   : > { %1433 = dma.hbm_to_vmem [thread:$0]  (!%p1835_p10), %s274_s19, 1024, %s276_s22, [#allocation6], %s2077_s27, %s2077_s27, %s2078_s28  }
  0x18   : > { %s290_s26 = sshll.u32 %s2087_s5, 4  ;;  %s1731_s19 = smov [#allocation8]   ;;  %s291_s26 = int_to_ptr.hbm [resolvable:$true] %s290_s26 }
  0x19   : > { %1436 = dma.hbm_to_vmem [thread:$0]  (!%p1835_p10), %s291_s26, 1024, %s293_s14, [#allocation6], %s2077_s27, %s2077_s27, %s2078_s28  }
  0x1a   : > { %s307_s21 = sshll.u32 %s2088_s7, 4  ;;  %s309_s22 = sshll.u32 %s1731_s19, 4  ;;  %s308_s21 = int_to_ptr.hbm [resolvable:$true] %s307_s21  ;;  %s310_s22 = int_to_ptr.vmem [resolvable:$true] %s309_s22 }
  0x1b   : > { %1439 = dma.hbm_to_vmem [thread:$0]  (!%p1835_p10), %s308_s21, 1024, %s310_s22, [#allocation9], %s2077_s27, %s2077_s27, %s2078_s28  }
  0x1c   : > { %s31_s25 = ssub.s32 %s1725_s12, %s1857_s24  ;;  %s34_s29 = sadd.s32 1, %s1721_s11 }
  0x1d   : > { %p32_p12 = scmp.eq.s32.totalorder %s31_s25, 0  ;;  %p41_p13 = scmp.ne.s32.totalorder %s1721_s11, %s1717_s10 }
  0x1e   : > { %p42_p0 = scmp.eq.s32.totalorder %s1725_s12, 0  ;;  %p1451_p5 = scmp.lt.s32.totalorder %s1725_s12, 2 }
  0x1f   : > { %s1871_s17 = scalar_select %p32_p12, %s1721_s11, %s34_s29  }
  0x20   : > { %p1875_p3 = por %p249_p2, %p41_p13  ;;  %s326_s14 = sand.u32 1, %s1721_s11  }
  0x21   : > { %s1365_s23 = sshll.u32 %s1725_s12, 6  ;;  %p43_p7 = por %p42_p0, %p41_p13 }
  0x22   : > { %s1220_s18 = sshll.u32 %s326_s14, 6  ;;  %s335_s21 = scalar_lea.hbm %s2067_s0, %s1365_s23 }
  0x23   : > { %s336_s22 = sshll.u32 %s335_s21, 4  ;;  %s330_s25 = scalar_lea.vmem [#allocation2], %s1220_s18  ;;  %s337_s22 = int_to_ptr.hbm [resolvable:$true] %s336_s22 }
  0x24   : > { %s338_s27 = sshll.u32 %s330_s25, 4  ;;  %p1885_p9 = pnand %p1451_p5, %p43_p7  ;;  %s339_s27 = int_to_ptr.vmem [resolvable:$true] %s338_s27 }
  0x25   : > { %s327_s28 = scalar_lea.sflag [#allocation3], %s326_s14  ;;  %s1621_s5 = sshra.s32 %s337_s22, 4  ;;  %s1622_s5 = int_to_ptr.hbm [resolvable:$true] %s1621_s5 }
  0x26   : > { %s1623_s7 = scalar_lea.hbm %s1622_s5, 64  ;;  %p1625_p10 = pneg %p1885_p9 }
  0x27   : > { %p1624_p2 = scmp.ne.s32.totalorder %s1622_s5, %s1623_s7  ;;  %s1628_s18 = scalar_lea.hbm %s2067_s0, 128 }
  0x28   : > { %p1629_p0 = scmp.lt.s32.totalorder %s1622_s5, %s2067_s0  ;;  %p1630_p5 = scmp.lt.s32.totalorder %s1628_s18, %s1623_s7 }
  0x29   : > { %p1626_p12 = pnand %p1625_p10, %p1624_p2 }
  0x2a   : > { %p1631_p7 = por %p1630_p5, %p1629_p0 }
  0x2b   : > { %p1627_p13 = pneg %p1626_p12 }
  0x2d   : > { %p1632_p11 = pnand %p1631_p7, %p1627_p13 }
  0x2f   : > { %1635 = shalt.err (!%p1632_p11)
}
  0x30   : > { %s2091_s14 = smov 4   ;;  %s2092_s25 = smov 64  }
  0x31   : > { %1443 = dma.hbm_to_vmem [thread:$0]  (!%p1885_p9), %s337_s22, 1024, %s339_s27, %s327_s28, %s2092_s25, %s2092_s25, %s2091_s14  }
  0x32   : > { %363 = sbr.rel (%p1827_p8) target bundleno = 908 (0x38c), region = 56  ;;  %s1905_s3 = sand.u32 (!%p1827_p8), 1, %s1717_s10  }
  0x33   : > { %s1224_s5 = sshll.u32 (!%p1827_p8), %s1905_s3, 6  ;;  %s366_s7 = scalar_lea.sflag (!%p1827_p8), [#allocation3], %s1905_s3 }
  0x34   : > { %s1909_s23 = scalar_lea.vmem (!%p1827_p8), [#allocation2], %s1224_s5 }
  0x37   : > { %1696 = dma.done.wait (%p1814_p4), %s366_s7, 1024  }
  0x38   : > { %1698 = vsyncadd (%p1814_p4), %s366_s7, 4294966272 }
  0x39   : > { %1700 = dma.done.wait (%p48_p1), [#allocation6], 2048  }
  0x3a   : > { %1702 = vsyncadd (%p48_p1), [#allocation6], 4294965248 }
  0x3b   : > { %1704 = dma.done.wait (%p48_p1), [#allocation9], 1024  }
  0x3c   : > { %1706 = vsyncadd (%p48_p1), [#allocation9], 4294966272  ;;  %v1381_v0 = vld [vmem:[#allocation5 + $0x38] sm:$0xff]  ;;  %v1380_v1 = vld [vmem:[#allocation5 + $0x30] sm:$0xff]  ;;  %p427_p1 = scmp.lt.s32.totalorder %s1805_s13, 1  ;;  %s1362_s15 = sshll.u32 %s1805_s13, 3 }
  0x3d   : > { %566 = vmatpush.bf16.msra.mxu0 %v1381_v0  ;;  %1398 = vmatpush.bf16.msra.mxu3 %v1381_v0  ;;  %v1379_v2 = vld [vmem:[#allocation5 + $0x28] sm:$0xff]  ;;  %v1378_v3 = vld [vmem:[#allocation5 + $0x20] sm:$0xff]  ;;  %v1377_v4 = vld [vmem:[#allocation5 + $0x18] sm:$0xff]  ;;  %s1228_s20 = sshll.u32 %s1905_s3, 3  ;;  %s1089_s22 = scalar_lea.hbm %s2076_s9, %s1362_s15 }
  0x3e   : > { %v1376_v5 = vld [vmem:[#allocation5 + $0x10] sm:$0xff]  ;;  %v1375_v6 = vld [vmem:[#allocation5 + $0x8] sm:$0xff]  ;;  %v1374_v7 = vld [vmem:[#allocation5] sm:$0xff]  ;;  %s428_s27 = scalar_select %p427_p1, %s1805_s13, 1 }
  0x3f   : > { %v1366_v8 = vld [vmem:[%s1909_s23] sm:$0xff]  ;;  %v1372_v9 = vld [vmem:[%s1909_s23 + $0x30] sm:$0xff]  ;;  %v1367_v10 = vld [vmem:[%s1909_s23 + $0x8] sm:$0xff]  ;;  %s426_s29 = scalar_lea.vmem [#allocation10], %s1228_s20  ;;  %s1093_s19 = sshll.u32 %s1089_s22, 4  ;;  %s1094_s19 = int_to_ptr.hbm [resolvable:$true] %s1093_s19 }
  0x40   : > { %v1373_v11 = vld [vmem:[%s1909_s23 + $0x38] sm:$0xff]  ;;  %v1368_v12 = vld [vmem:[%s1909_s23 + $0x10] sm:$0xff]  ;;  %v1370_v14 = vld [vmem:[%s1909_s23 + $0x20] sm:$0xff]  ;;  %s1229_s28 = sshll.u32 %s428_s27, 3  ;;  %s429_s14 = scalar_lea.vmem %s2068_s1, %s428_s27 }
  0x41   : > { %567 = vmatpush.bf16.msra.mxu0 %v1380_v1  ;;  %1399 = vmatpush.bf16.msra.mxu3 %v1380_v1  ;;  %v1369_v13 = vld [vmem:[%s1909_s23 + $0x18] sm:$0xff]  ;;  %v1371_v15 = vld [vmem:[%s1909_s23 + $0x28] sm:$0xff]  ;;  %v1388_v17 = vld [vmem:[#allocation7 + $0x30] sm:$0xff]  ;;  %s433_s18 = scalar_lea.vmem %s2069_s2, %s1229_s28  ;;  %s1079_s21 = scalar_lea.sflag [#allocation4], %s1905_s3 }
  0x42   : > { %v1389_v16 = vld [vmem:[#allocation7 + $0x38] sm:$0xff]  ;;  %v1387_v18 = vld [vmem:[#allocation7 + $0x28] sm:$0xff]  ;;  %v1386_v19 = vld [vmem:[#allocation7 + $0x20] sm:$0xff]  ;;  %s1671_s7 = scalar_lea.hbm %s2076_s9, 16 }
  0x43   : > { %835 = vmatpush.bf16.msra.mxu1 %v1389_v16  ;;  %v1385_v20 = vld [vmem:[#allocation7 + $0x18] sm:$0xff]  ;;  %v1384_v21 = vld [vmem:[#allocation7 + $0x10] sm:$0xff]  ;;  %v1383_v22 = vld [vmem:[#allocation7 + $0x8] sm:$0xff] }
  0x44   : > { %v1934_v23 = vld [vmem:[%s2071_s4] ss:$0 sm:$0xff] }
  0x45   : > { %568 = vmatpush.bf16.msra.mxu0 %v1379_v2  ;;  %1400 = vmatpush.bf16.msra.mxu3 %v1379_v2  ;;  %v1382_v24 = vld [vmem:[#allocation7] sm:$0xff] }
  0x47   : > { %836 = vmatpush.bf16.msra.mxu1 %v1388_v17 }
  0x49   : > { %569 = vmatpush.bf16.msra.mxu0 %v1378_v3  ;;  %1401 = vmatpush.bf16.msra.mxu3 %v1378_v3 }
  0x4b   : > { %837 = vmatpush.bf16.msra.mxu1 %v1387_v18 }
  0x4d   : > { %570 = vmatpush.bf16.msra.mxu0 %v1377_v4  ;;  %1402 = vmatpush.bf16.msra.mxu3 %v1377_v4 }
  0x4f   : > { %838 = vmatpush.bf16.msra.mxu1 %v1386_v19 }
  0x51   : > { %571 = vmatpush.bf16.msra.mxu0 %v1376_v5  ;;  %1403 = vmatpush.bf16.msra.mxu3 %v1376_v5 }
  0x53   : > { %839 = vmatpush.bf16.msra.mxu1 %v1385_v20 }
  0x55   : > { %572 = vmatpush.bf16.msra.mxu0 %v1375_v6  ;;  %1404 = vmatpush.bf16.msra.mxu3 %v1375_v6 }
  0x57   : > { %840 = vmatpush.bf16.msra.mxu1 %v1384_v21 }
  0x59   : > { %573 = vmatpush.bf16.msra.mxu0 %v1374_v7  ;;  %1405 = vmatpush.bf16.msra.mxu3 %v1374_v7 }
  0x5b   : > { %841 = vmatpush.bf16.msra.mxu1 %v1383_v22 }
  0x5c   : > { %574 = vmatmul.bf16.vlgmr.msra.gmra.mxu0 %v1366_v8  ;;  %604 = vmatmul.bf16.vlgmr.msra.gmra.mxu3 %v1372_v9 }
  0x5d   : > { %1406 = vmatpush.bf16.msrb.mxu3 %v1389_v16 }
  0x5f   : > { %842 = vmatpush.bf16.msra.mxu1 %v1382_v24 }
  0x61   : > { %1407 = vmatpush.bf16.msrb.mxu3 %v1388_v17 }
  0x65   : > { %1408 = vmatpush.bf16.msrb.mxu3 %v1387_v18 }
  0x69   : > { %1409 = vmatpush.bf16.msrb.mxu3 %v1386_v19 }
  0x6c   : > { %579 = vmatmul.bf16.gmra.mxu0 %v1367_v10  ;;  %609 = vmatmul.bf16.gmra.mxu3 %v1373_v11 }
  0x6d   : > { %1410 = vmatpush.bf16.msrb.mxu3 %v1385_v20 }
  0x71   : > { %1411 = vmatpush.bf16.msrb.mxu3 %v1384_v21 }
  0x75   : > { %1412 = vmatpush.bf16.msrb.mxu3 %v1383_v22 }
  0x79   : > { %1413 = vmatpush.bf16.msrb.mxu3 %v1382_v24 }
  0x7c   : > { %584 = vmatmul.bf16.gmra.mxu0 %v1368_v12 }
  0x8c   : > { %589 = vmatmul.bf16.gmra.mxu0 %v1369_v13 }
  0x9c   : > { %594 = vmatmul.bf16.gmra.mxu0 %v1370_v14 }
  0xac   : > { %599 = vmatmul.bf16.gmra.mxu0 %v1371_v15 }
  0xd9   : > { %v575_v25 = vpop.f32.mrf.mxu0 }
  0xda   : > { %v1937_v26 = vadd.f32 %v1934_v23, %v575_v25 }
  0xdc   : > { %v615_v27 = vmul.f32 %v1937_v26, %v1937_v26 }
  0xde   : > { %v631_v28 = vmul.f32 %v615_v27, %v1937_v26 }
  0xdf   : > { %v605_v29 = vpop.f32.mrf.mxu3 }
  0xe0   : > { %v647_v30 = vmul.f32 0.044715, %v631_v28  ;;  %v1943_v31 = vadd.f32 %v1934_v23, %v605_v29 }
  0xe1   : > { %v577_v32 = vpop.f32.mrf.mxu0 }
  0xe2   : > { %v663_v33 = vadd.f32 %v647_v30, %v1937_v26  ;;  %v627_v34 = vmul.f32 %v1943_v31, %v1943_v31  ;;  %v578_v35 = vadd.f32 %v1934_v23, %v577_v32 }
  0xe4   : > { %v643_v36 = vmul.f32 %v627_v34, %v1943_v31  ;;  %v616_v37 = vmul.f32 %v578_v35, %v578_v35  ;;  %v679_v38 = vmul.f32 0.7978846, %v663_v33 }
  0xe6   : > { %v659_v39 = vmul.f32 0.044715, %v643_v36  ;;  %v632_v40 = vmul.f32 %v616_v37, %v578_v35  ;;  %1499 = vtanh.f32 %v679_v38 }
  0xe7   : > { %v607_v41 = vpop.f32.mrf.mxu3 }
  0xe8   : > { %v675_v42 = vadd.f32 %v659_v39, %v1943_v31  ;;  %v648_v43 = vmul.f32 0.044715, %v632_v40  ;;  %v1952_v44 = vadd.f32 %v1934_v23, %v607_v41 }
  0xe9   : > { %v580_v45 = vpop.f32.mrf.mxu0 }
  0xea   : > { %v691_v46 = vmul.f32 0.7978846, %v675_v42  ;;  %v664_v47 = vadd.f32 %v648_v43, %v578_v35  ;;  %v628_v48 = vmul.f32 %v1952_v44, %v1952_v44  ;;  %v1957_v49 = vadd.f32 %v1934_v23, %v580_v45 }
  0xec   : > { %1501 = vtanh.f32 %v691_v46  ;;  %v644_v50 = vmul.f32 %v628_v48, %v1952_v44  ;;  %v617_v51 = vmul.f32 %v1957_v49, %v1957_v49  ;;  %v680_v52 = vmul.f32 0.7978846, %v664_v47  ;;  %v1500_v53 = vpop.eup %1499 }
  0xed   : > { %v711_v61 = vadd.f32 1.0, %v1500_v53 }
  0xee   : > { %v660_v54 = vmul.f32 0.044715, %v644_v50  ;;  %v633_v55 = vmul.f32 %v617_v51, %v1957_v49  ;;  %1503 = vtanh.f32 %v680_v52 }
  0xef   : > { %v610_v56 = vpop.f32.mrf.mxu3  ;;  %v727_v8 = vmul.f32 0.5, %v711_v61 }
  0xf0   : > { %v676_v57 = vadd.f32 %v660_v54, %v1952_v44  ;;  %v649_v58 = vmul.f32 0.044715, %v633_v55  ;;  %v1965_v59 = vadd.f32 %v1934_v23, %v610_v56 }
  0xf1   : > { %v582_v60 = vpop.f32.mrf.mxu0  ;;  %v743_v18 = vmul.f32 %v727_v8, %v1937_v26 }
  0xf2   : > { %v1502_v62 = vpop.eup %1501  ;;  %v692_v63 = vmul.f32 0.7978846, %v676_v57  ;;  %v665_v0 = vadd.f32 %v649_v58, %v1957_v49  ;;  %v629_v1 = vmul.f32 %v1965_v59, %v1965_v59  ;;  %v1971_v2 = vadd.f32 %v1934_v23, %v582_v60 }
  0xf3   : > { %v723_v9 = vadd.f32 1.0, %v1502_v62 }
  0xf4   : > { %v1504_v3 = vpop.eup %1503  ;;  %1505 = vtanh.f32 %v692_v63  ;;  %v645_v4 = vmul.f32 %v629_v1, %v1965_v59  ;;  %v618_v5 = vmul.f32 %v1971_v2, %v1971_v2  ;;  %v681_v6 = vmul.f32 0.7978846, %v665_v0 }
  0xf5   : > { %v712_v7 = vadd.f32 1.0, %v1504_v3  ;;  %v739_v20 = vmul.f32 0.5, %v723_v9 }
  0xf6   : > { %v661_v10 = vmul.f32 0.044715, %v645_v4  ;;  %v634_v11 = vmul.f32 %v618_v5, %v1971_v2  ;;  %1507 = vtanh.f32 %v681_v6 }
  0xf7   : > { %v612_v12 = vpop.f32.mrf.mxu3  ;;  %v728_v13 = vmul.f32 0.5, %v712_v7  ;;  %v755_v34 = vmul.f32 %v739_v20, %v1943_v31 }
  0xf8   : > { %v677_v14 = vadd.f32 %v661_v10, %v1965_v59  ;;  %v650_v15 = vmul.f32 0.044715, %v634_v11  ;;  %v1979_v16 = vadd.f32 %v1934_v23, %v612_v12 }
  0xf9   : > { %v585_v17 = vpop.f32.mrf.mxu0  ;;  %v744_v19 = vmul.f32 %v728_v13, %v578_v35 }
  0xfa   : > { %v1506_v21 = vpop.eup %1505  ;;  %v666_v22 = vadd.f32 %v650_v15, %v1971_v2  ;;  %v630_v24 = vmul.f32 %v1979_v16, %v1979_v16  ;;  %v1986_v25 = vadd.f32 %v1934_v23, %v585_v17  ;;  %v693_v27 = vmul.f32 0.7978846, %v677_v14 }
  0xfb   : > { %v759_v28 = vpack.c.bf16 %v744_v19, %v743_v18  ;;  %v724_v29 = vadd.f32 1.0, %v1506_v21 }
  0xfc   : > { %v646_v30 = vmul.f32 %v630_v24, %v1979_v16  ;;  %v619_v32 = vmul.f32 %v1986_v25, %v1986_v25  ;;  %v682_v26 = vmul.f32 0.7978846, %v666_v22  ;;  %1509 = vtanh.f32 %v693_v27  ;;  %v1508_v35 = vpop.eup %1507 }
  0xfd   : > { %843 = vmatmul.bf16.vlgmr.msra.gmra.mxu1 %v759_v28  ;;  %v740_v33 = vmul.f32 0.5, %v724_v29  ;;  %v713_v43 = vadd.f32 1.0, %v1508_v35 }
  0xfe   : > { %v662_v36 = vmul.f32 0.044715, %v646_v30  ;;  %v635_v37 = vmul.f32 %v619_v32, %v1986_v25  ;;  %1511 = vtanh.f32 %v682_v26 }
  0xff   : > { %v756_v38 = vmul.f32 %v740_v33, %v1952_v44  ;;  %v729_v53 = vmul.f32 0.5, %v713_v43 }
 0x100   : > { %v678_v39 = vadd.f32 %v662_v36, %v1979_v16  ;;  %v651_v40 = vmul.f32 0.044715, %v635_v37 }
 0x101   : > { %v587_v41 = vpop.f32.mrf.mxu0  ;;  %v765_v42 = vpack.c.bf16 %v756_v38, %v755_v34  ;;  %v745_v58 = vmul.f32 %v729_v53, %v1957_v49 }
 0x102   : > { %v1510_v45 = vpop.eup %1509  ;;  %v667_v46 = vadd.f32 %v651_v40, %v1986_v25  ;;  %v588_v47 = vadd.f32 %v1934_v23, %v587_v41  ;;  %v694_v48 = vmul.f32 0.7978846, %v678_v39 }
 0x103   : > { %873 = vmatmul.bf16.vlgmr.msrb.gmra.mxu3 %v765_v42  ;;  %v725_v44 = vadd.f32 1.0, %v1510_v45 }
 0x104   : > { %v1512_v31 = vpop.eup %1511  ;;  %v620_v50 = vmul.f32 %v588_v47, %v588_v47  ;;  %1513 = vtanh.f32 %v694_v48  ;;  %v683_v51 = vmul.f32 0.7978846, %v667_v46 }
 0x105   : > { %v714_v52 = vadd.f32 1.0, %v1512_v31  ;;  %v741_v61 = vmul.f32 0.5, %v725_v44 }
 0x106   : > { %v636_v54 = vmul.f32 %v620_v50, %v588_v47  ;;  %1515 = vtanh.f32 %v683_v51 }
 0x107   : > { %v730_v55 = vmul.f32 0.5, %v714_v52  ;;  %v757_v7 = vmul.f32 %v741_v61, %v1965_v59 }
 0x108   : > { %v652_v56 = vmul.f32 0.044715, %v636_v54 }
 0x109   : > { %v590_v57 = vpop.f32.mrf.mxu0  ;;  %v746_v60 = vmul.f32 %v730_v55, %v1971_v2 }
 0x10a   : > { %v1514_v62 = vpop.eup %1513  ;;  %v668_v63 = vadd.f32 %v652_v56, %v588_v47  ;;  %v591_v0 = vadd.f32 %v1934_v23, %v590_v57 }
 0x10b   : > { %v760_v1 = vpack.c.bf16 %v746_v60, %v745_v58  ;;  %v726_v3 = vadd.f32 1.0, %v1514_v62 }
 0x10c   : > { %v621_v4 = vmul.f32 %v591_v0, %v591_v0  ;;  %v684_v5 = vmul.f32 0.7978846, %v668_v63  ;;  %v1516_v8 = vpop.eup %1515 }
 0x10d   : > { %848 = vmatmul.bf16.gmra.mxu1 %v760_v1  ;;  %v742_v6 = vmul.f32 0.5, %v726_v3  ;;  %v715_v12 = vadd.f32 1.0, %v1516_v8 }
 0x10e   : > { %v637_v9 = vmul.f32 %v621_v4, %v591_v0  ;;  %1517 = vtanh.f32 %v684_v5 }
 0x10f   : > { %v758_v49 = vmul.f32 %v742_v6, %v1979_v16  ;;  %v731_v20 = vmul.f32 0.5, %v715_v12 }
 0x110   : > { %v653_v10 = vmul.f32 0.044715, %v637_v9 }
 0x111   : > { %v592_v2 = vpop.f32.mrf.mxu0  ;;  %v766_v11 = vpack.c.bf16 %v758_v49, %v757_v7  ;;  %v747_v16 = vmul.f32 %v731_v20, %v1986_v25  ;;  %v900_v20 = vld [vmem:[%s433_s18] sm:$0xff]  ;;  %s1091_s18 = sshll.u32 %s426_s29, 4  ;;  %s1092_s18 = int_to_ptr.vmem [resolvable:$true] %s1091_s18 }
 0x112   : > { %v669_v13 = vadd.f32 %v653_v10, %v591_v0  ;;  %v593_v14 = vadd.f32 %v1934_v23, %v592_v2  ;;  %vm901_vm0 = vcmp.gt.s32.totalorder %v900_v20, 0 }
 0x113   : > { %878 = vmatmul.bf16.gmra.mxu3 %v766_v11 }
 0x114   : > { %v1518_v15 = vpop.eup %1517  ;;  %v622_v17 = vmul.f32 %v593_v14, %v593_v14  ;;  %v685_v18 = vmul.f32 0.7978846, %v669_v13 }
 0x115   : > { %v716_v19 = vadd.f32 1.0, %v1518_v15 }
 0x116   : > { %v638_v21 = vmul.f32 %v622_v17, %v593_v14  ;;  %1519 = vtanh.f32 %v685_v18 }
 0x117   : > { %v732_v59 = vmul.f32 0.5, %v716_v19 }
 0x118   : > { %v654_v22 = vmul.f32 0.044715, %v638_v21  ;;  %v902_v21 = vsel %vm901_vm0, %v900_v20, 0 }
 0x119   : > { %v595_v24 = vpop.f32.mrf.mxu0  ;;  %v748_v27 = vmul.f32 %v732_v59, %v588_v47  ;;  %vm903_vm1 = vcmp.lt.s32.totalorder %v902_v21, 127  ;;  %v1732_v59 = vmov 0  }
 0x11a   : > { %v670_v28 = vadd.f32 %v654_v22, %v593_v14  ;;  %v596_v29 = vadd.f32 %v1934_v23, %v595_v24  ;;  %1495 = vset.pattern.permute.xlu0 %v1732_v59  ;;  %v904_v22 = vsel %vm903_vm1, %v902_v21, 127  ;;  %v1071_v24 = vld [vmem:[%s429_s14] sm:$0x1]  ;;  %s1665_s14 = sshra.s32 %s1094_s19, 4  ;;  %s1666_s14 = int_to_ptr.hbm [resolvable:$true] %s1665_s14 }
 0x11b   : > { %v761_v30 = vpack.c.bf16 %v748_v27, %v747_v16  ;;  %908 = vperm.xlu0 %1495, %v904_v22   ;;  %vm1072_vm2 = vcmp.gt.f32.partialorder %v1071_v24, 0.0  ;;  %s1667_s13 = scalar_lea.hbm %s1666_s14, 8  ;;  %p1672_p9 = scmp.lt.s32.totalorder %s1666_s14, %s2076_s9 }
 0x11c   : > { %v623_v32 = vmul.f32 %v596_v29, %v596_v29  ;;  %v686_v26 = vmul.f32 0.7978846, %v670_v28  ;;  %v1520_v33 = vpop.eup %1519  ;;  %v2016_v16 = vsel %vm1072_vm2, 1, %v1732_v59  ;;  %v1497_v28 = vld [vmem:[%s2073_s6] ss:$0 sm:$0xff]  ;;  %p1668_p4 = scmp.ne.s32.totalorder %s1666_s14, %s1667_s13  ;;  %p1673_p2 = scmp.lt.s32.totalorder %s1671_s7, %s1667_s13 }
 0x11d   : > { %853 = vmatmul.bf16.gmra.mxu1 %v761_v30  ;;  %v717_v37 = vadd.f32 1.0, %v1520_v33 }
 0x11e   : > { %v639_v34 = vmul.f32 %v623_v32, %v596_v29  ;;  %1521 = vtanh.f32 %v686_v26  ;;  %p1669_p8 = pnand %p1668_p4, %p1875_p3  ;;  %p1674_p10 = por %p1673_p2, %p1672_p9 }
 0x11f   : > { %v733_v43 = vmul.f32 0.5, %v717_v37 }
 0x120   : > { %v655_v35 = vmul.f32 0.044715, %v639_v34  ;;  %p1670_p11 = pneg %p1669_p8 }
 0x121   : > { %v597_v36 = vpop.f32.mrf.mxu0  ;;  %v749_v31 = vmul.f32 %v733_v43, %v591_v0 }
 0x122   : > { %v671_v38 = vadd.f32 %v655_v35, %v596_v29  ;;  %v598_v39 = vadd.f32 %v1934_v23, %v597_v36  ;;  %p1675_p12 = pnand %p1674_p10, %p1670_p11 }
 0x124   : > { %v1522_v40 = vpop.eup %1521  ;;  %v624_v41 = vmul.f32 %v598_v39, %v598_v39  ;;  %v687_v25 = vmul.f32 0.7978846, %v671_v38 }
 0x125   : > { %v718_v42 = vadd.f32 1.0, %v1522_v40 }
 0x126   : > { %v640_v45 = vmul.f32 %v624_v41, %v598_v39  ;;  %1523 = vtanh.f32 %v687_v25 }
 0x127   : > { %v734_v46 = vmul.f32 0.5, %v718_v42 }
 0x128   : > { %v656_v47 = vmul.f32 0.044715, %v640_v45 }
 0x129   : > { %v600_v48 = vpop.f32.mrf.mxu0  ;;  %v750_v50 = vmul.f32 %v734_v46, %v593_v14 }
 0x12a   : > { %v672_v51 = vadd.f32 %v656_v47, %v598_v39  ;;  %v601_v52 = vadd.f32 %v1934_v23, %v600_v48 }
 0x12b   : > { %v762_v53 = vpack.c.bf16 %v750_v50, %v749_v31 }
 0x12c   : > { %v625_v44 = vmul.f32 %v601_v52, %v601_v52  ;;  %v688_v54 = vmul.f32 0.7978846, %v672_v51  ;;  %v1524_v55 = vpop.eup %1523 }
 0x12d   : > { %858 = vmatmul.bf16.gmra.mxu1 %v762_v53  ;;  %v719_v60 = vadd.f32 1.0, %v1524_v55 }
 0x12e   : > { %v641_v56 = vmul.f32 %v625_v44, %v601_v52  ;;  %1525 = vtanh.f32 %v688_v54 }
 0x12f   : > { %v735_v4 = vmul.f32 0.5, %v719_v60 }
 0x130   : > { %v657_v57 = vmul.f32 0.044715, %v641_v56 }
 0x131   : > { %v602_v58 = vpop.f32.mrf.mxu0  ;;  %v751_v8 = vmul.f32 %v735_v4, %v596_v29 }
 0x132   : > { %v673_v61 = vadd.f32 %v657_v57, %v601_v52  ;;  %v603_v62 = vadd.f32 %v1934_v23, %v602_v58 }
 0x134   : > { %v1526_v63 = vpop.eup %1525  ;;  %v626_v1 = vmul.f32 %v603_v62, %v603_v62  ;;  %v689_v0 = vmul.f32 0.7978846, %v673_v61 }
 0x135   : > { %v720_v3 = vadd.f32 1.0, %v1526_v63 }
 0x136   : > { %v642_v5 = vmul.f32 %v626_v1, %v603_v62  ;;  %1527 = vtanh.f32 %v689_v0 }
 0x137   : > { %v736_v6 = vmul.f32 0.5, %v720_v3 }
 0x138   : > { %v658_v7 = vmul.f32 0.044715, %v642_v5 }
 0x139   : > { %v752_v9 = vmul.f32 %v736_v6, %v598_v39 }
 0x13a   : > { %v674_v49 = vadd.f32 %v658_v7, %v603_v62 }
 0x13b   : > { %v763_v10 = vpack.c.bf16 %v752_v9, %v751_v8 }
 0x13c   : > { %v690_v2 = vmul.f32 0.7978846, %v674_v49  ;;  %v1528_v11 = vpop.eup %1527 }
 0x13d   : > { %863 = vmatmul.bf16.gmra.mxu1 %v763_v10  ;;  %v721_v23 = vadd.f32 1.0, %v1528_v11 }
 0x13e   : > { %1529 = vtanh.f32 %v690_v2 }
 0x13f   : > { %v737_v14 = vmul.f32 0.5, %v721_v23 }
 0x141   : > { %v753_v17 = vmul.f32 %v737_v14, %v601_v52 }
 0x144   : > { %v1530_v12 = vpop.eup %1529 }
 0x145   : > { %v722_v13 = vadd.f32 1.0, %v1530_v12 }
 0x147   : > { %v738_v15 = vmul.f32 0.5, %v722_v13 }
 0x149   : > { %v754_v18 = vmul.f32 %v738_v15, %v603_v62 }
 0x14b   : > { %v764_v19 = vpack.c.bf16 %v754_v18, %v753_v17 }
 0x14d   : > { %868 = vmatmul.bf16.gmra.mxu1 %v764_v19 }
 0x17a   : > { %v844_v27 = vpop.f32.mrf.mxu1 }
 0x17b   : > { %v845_v29 = vadd.f32 %v1497_v28, %v844_v27 }
 0x17d   : > { %v884_v32 = vpack.c.bf16 %v845_v29, %v845_v29 }
 0x17f   : > { %v930_v35 = vunpack.c.l.b16 %v884_v32 }
 0x182   : > { %v846_v30 = vpop.f32.mrf.mxu1 }
 0x183   : > { %v847_v26 = vadd.f32 %v1497_v28, %v846_v30 }
 0x185   : > { %v885_v33 = vpack.c.bf16 %v847_v26, %v847_v26 }
 0x186   : > { %v874_v34 = vpop.f32.mrf.mxu3 }
 0x187   : > { %v931_v36 = vunpack.c.l.b16 %v885_v33  ;;  %v875_v51 = vadd.f32 %v1497_v28, %v874_v34 }
 0x189   : > { %v2021_v37 = vpack.c.b16 %v931_v36, %v930_v35  ;;  %v896_v55 = vpack.c.bf16 %v875_v51, %v875_v51 }
 0x18a   : > { %v849_v38 = vpop.f32.mrf.mxu1 }
 0x18b   : > { %v850_v40 = vadd.f32 %v1497_v28, %v849_v38  ;;  %v942_v62 = vunpack.c.l.b16 %v896_v55  ;;  %v905_v38 = vlaneseq }
 0x18d   : > { %v886_v25 = vpack.c.bf16 %v850_v40, %v850_v40  ;;  %v906_v40 = vand.u32 127, %v905_v38 }
 0x18e   : > { %v876_v39 = vpop.f32.mrf.mxu3 }
 0x18f   : > { %v932_v46 = vunpack.c.l.b16 %v886_v25  ;;  %v877_v52 = vadd.f32 %v1497_v28, %v876_v39  ;;  %v1397_v25 = vld [vmem:[#allocation8 + $0x38] sm:$0xff] }
 0x190   : > { %1044 = vmatpush.bf16.msra.mxu3 %v1397_v25 }
 0x191   : > { %v897_v56 = vpack.c.bf16 %v877_v52, %v877_v52 }
 0x192   : > { %v851_v41 = vpop.f32.mrf.mxu1 }
 0x193   : > { %v852_v42 = vadd.f32 %v1497_v28, %v851_v41  ;;  %v943_v63 = vunpack.c.l.b16 %v897_v56  ;;  %v909_v41 = vpop.permute.xlu0 %908 }
 0x194   : > { %vm910_vm3 = vcmp.eq.s32.totalorder %v906_v40, %v909_v41 }
 0x195   : > { %v887_v43 = vpack.c.bf16 %v852_v42, %v852_v42  ;;  %v952_v0 = vpack.c.b16 %v943_v63, %v942_v62  ;;  %vm1327_vm4 = vmpackc.low %vm910_vm3, %vm910_vm3  ;;  %v1396_v42 = vld [vmem:[#allocation8 + $0x30] sm:$0xff] }
 0x196   : > { %v879_v45 = vpop.f32.mrf.mxu3  ;;  %1045 = vmatpush.bf16.msra.mxu3 %v1396_v42 }
 0x197   : > { %v933_v47 = vunpack.c.l.b16 %v887_v43  ;;  %v880_v48 = vadd.f32 %v1497_v28, %v879_v45  ;;  %v1395_v43 = vld [vmem:[#allocation8 + $0x28] sm:$0xff]  ;;  %v1394_v45 = vld [vmem:[#allocation8 + $0x20] sm:$0xff] }
 0x199   : > { %v2023_v31 = vpack.c.b16 %v933_v47, %v932_v46  ;;  %v898_v53 = vpack.c.bf16 %v880_v48, %v880_v48  ;;  %v1393_v46 = vld [vmem:[#allocation8 + $0x18] sm:$0xff]  ;;  %v1392_v47 = vld [vmem:[#allocation8 + $0x10] sm:$0xff]  ;;  %v1391_v48 = vld [vmem:[#allocation8 + $0x8] sm:$0xff] }
 0x19a   : > { %v854_v50 = vpop.f32.mrf.mxu1  ;;  %1046 = vmatpush.bf16.msra.mxu3 %v1395_v43 }
 0x19b   : > { %v944_v57 = vunpack.c.l.b16 %v898_v53  ;;  %v855_v22 = vadd.f32 %v1497_v28, %v854_v50  ;;  %v1390_v50 = vld [vmem:[#allocation8] sm:$0xff] }
 0x19d   : > { %v888_v26 = vpack.c.bf16 %v855_v22, %v855_v22 }
 0x19e   : > { %v881_v44 = vpop.f32.mrf.mxu3  ;;  %1047 = vmatpush.bf16.msra.mxu3 %v1394_v45 }
 0x19f   : > { %v882_v54 = vadd.f32 %v1497_v28, %v881_v44  ;;  %v934_v36 = vunpack.c.l.b16 %v888_v26  ;;  %v1498_v44 = vld [vmem:[%s2075_s8] ss:$0 sm:$0xff] }
 0x1a1   : > { %v899_v58 = vpack.c.bf16 %v882_v54, %v882_v54 }
 0x1a2   : > { %v856_v60 = vpop.f32.mrf.mxu1  ;;  %1048 = vmatpush.bf16.msra.mxu3 %v1393_v46 }
 0x1a3   : > { %v945_v61 = vunpack.c.l.b16 %v899_v58  ;;  %v857_v19 = vadd.f32 %v1497_v28, %v856_v60 }
 0x1a5   : > { %v953_v1 = vpack.c.b16 %v945_v61, %v944_v57  ;;  %v889_v29 = vpack.c.bf16 %v857_v19, %v857_v19  ;;  %v1074_v57 = vperm.slane %v2016_v16, 0 }
 0x1a6   : > { %1049 = vmatpush.bf16.msra.mxu3 %v1392_v47 }
 0x1a7   : > { %962 = vmatpush.bf16.msra.mxu2 %v953_v1  ;;  %v935_v34 = vunpack.c.l.b16 %v889_v29  ;;  %vm1075_vm5 = vcmp.eq.s32.totalorder %v1074_v57, 1 }
 0x1a9   : > { %v948_v39 = vpack.c.b16 %v935_v34, %v934_v36 }
 0x1aa   : > { %v859_v3 = vpop.f32.mrf.mxu1  ;;  %1050 = vmatpush.bf16.msra.mxu3 %v1391_v48 }
 0x1ab   : > { %963 = vmatpush.bf16.msra.mxu2 %v952_v0  ;;  %v860_v14 = vadd.f32 %v1497_v28, %v859_v3 }
 0x1ad   : > { %v890_v24 = vpack.c.bf16 %v860_v14, %v860_v14 }
 0x1ae   : > { %1051 = vmatpush.bf16.msra.mxu3 %v1390_v50 }
 0x1af   : > { %v936_v33 = vunpack.c.l.b16 %v890_v24 }
 0x1b2   : > { %v861_v4 = vpop.f32.mrf.mxu1 }
 0x1b3   : > { %v862_v23 = vadd.f32 %v1497_v28, %v861_v4 }
 0x1b5   : > { %v891_v20 = vpack.c.bf16 %v862_v23, %v862_v23 }
 0x1b7   : > { %v937_v30 = vunpack.c.l.b16 %v891_v20 }
 0x1b9   : > { %v949_v35 = vpack.c.b16 %v937_v30, %v936_v33 }
 0x1ba   : > { %v864_v5 = vpop.f32.mrf.mxu1 }
 0x1bb   : > { %v865_v10 = vadd.f32 %v1497_v28, %v864_v5 }
 0x1bd   : > { %v892_v15 = vpack.c.bf16 %v865_v10, %v865_v10 }
 0x1bf   : > { %v938_v27 = vunpack.c.l.b16 %v892_v15 }
 0x1c2   : > { %v866_v6 = vpop.f32.mrf.mxu1 }
 0x1c3   : > { %v867_v9 = vadd.f32 %v1497_v28, %v866_v6 }
 0x1c5   : > { %v893_v12 = vpack.c.bf16 %v867_v9, %v867_v9 }
 0x1c7   : > { %v939_v21 = vunpack.c.l.b16 %v893_v12 }
 0x1c9   : > { %v950_v32 = vpack.c.b16 %v939_v21, %v938_v27 }
 0x1ca   : > { %v869_v7 = vpop.f32.mrf.mxu1 }
 0x1cb   : > { %v870_v8 = vadd.f32 %v1497_v28, %v869_v7 }
 0x1cd   : > { %v894_v2 = vpack.c.bf16 %v870_v8, %v870_v8 }
 0x1cf   : > { %v940_v17 = vunpack.c.l.b16 %v894_v2 }
 0x1d2   : > { %v871_v49 = vpop.f32.mrf.mxu1 }
 0x1d3   : > { %v872_v11 = vadd.f32 %v1497_v28, %v871_v49  ;;  %v1733_v28 = vmov 1.0|1.0  }
 0x1d5   : > { %v895_v13 = vpack.c.bf16 %v872_v11, %v872_v11 }
 0x1d7   : > { %v941_v18 = vunpack.c.l.b16 %v895_v13 }
 0x1d9   : > { %v951_v59 = vpack.c.b16 %v941_v18, %v940_v17 }
 0x1db   : > { %964 = vmatpush.bf16.msra.mxu2 %v951_v59 }
 0x1df   : > { %965 = vmatpush.bf16.msra.mxu2 %v950_v32 }
 0x1e3   : > { %966 = vmatpush.bf16.msra.mxu2 %v949_v35 }
 0x1e7   : > { %967 = vmatpush.bf16.msra.mxu2 %v948_v39 }
 0x1eb   : > { %968 = vmatpush.bf16.msra.mxu2 %v2023_v31 }
 0x1ef   : > { %969 = vmatpush.bf16.msra.mxu2 %v2021_v37 }
 0x1f2   : > { %1328 = vmatmul.msk.bf16.vlgmr.msra.gmra.mxu2 %vm1327_vm4, %v1733_v28 }
 0x1f3   : > { %1058 = vmatpush.bf16.xpose.msrb.mxu2 %v953_v1 }
 0x1fb   : > { %1059 = vmatpush.bf16.xpose.msrb.mxu2 %v952_v0 }
 0x203   : > { %1060 = vmatpush.bf16.xpose.msrb.mxu2 %v951_v59 }
 0x20b   : > { %1061 = vmatpush.bf16.xpose.msrb.mxu2 %v950_v32 }
 0x213   : > { %1062 = vmatpush.bf16.xpose.msrb.mxu2 %v949_v35 }
 0x21b   : > { %1063 = vmatpush.bf16.xpose.msrb.mxu2 %v948_v39 }
 0x223   : > { %1064 = vmatpush.bf16.xpose.msrb.mxu2 %v2023_v31 }
 0x22b   : > { %1065 = vmatpush.bf16.xpose.msrb.mxu2 %v2021_v37 }
 0x275   : > { %v971_v51 = vpop.f32.mrf.mxu2 }
 0x276   : > { %v975_v52 = vpack.c.bf16 %v971_v51, %v971_v51 }
 0x278   : > { %1052 = vmatmul.bf16.vlgmr.msra.gmra.mxu3 %v975_v52 }
 0x27d   : > { %v973_v53 = vpop.f32.mrf.mxu2 }
 0x2fb   : > { %v1053_v54 = vpop.f32.mrf.mxu3 }
 0x2fc   : > { %v1054_v55 = vadd.f32 %v1498_v44, %v1053_v54 }
 0x2fe   : > { %v1057_v56 = vpack.c.bf16 %v1054_v55, %v1054_v55 }
 0x300   : > { %1066 = vmatmul.bf16.vlgmr.msrb.gmra.mxu2 %v1057_v56 }
 0x303   : > { %v1055_v31 = vpop.f32.mrf.mxu3 }
 0x383   : > { %v1067_v37 = vpop.f32.mrf.mxu2 }
 0x384   : > { %v1076_v58 = vsel %vm1075_vm5, %v1067_v37, -1e+09 }
 0x385   : > { %1077 = vst [vmem:[%s426_s29] sm:$0xff] %v1076_v58 }
 0x386   : > { %1678 = shalt.err (!%p1675_p12)
}
 0x387   : > { %1428 = dma.vmem_to_hbm [thread:$0]  (%p1875_p3), %s1092_s18, 128, %s1094_s19, %s1079_s21  }
 0x38b   : > { %v1069_v16 = vpop.f32.mrf.mxu2 }
 0x38c PF: > { %s1105_s3 = sand.u32 1, %s1713_s30   ;;  %p2093_p13 = scmp.ge.s32.totalorder %s1725_s12, 2 }
 0x38d   : > { %s1106_s20 = scalar_lea.sflag [#allocation4], %s1105_s3 }
 0x38e   : > { %p1445_p0 = pnand %p2093_p13, %p1819_p6 }
 0x390   : > { %p1446_p5 = pneg %p1445_p0 }
 0x392   : > { %1708 = dma.done.wait (%p1446_p5), %s1106_s20, 128  }
 0x393   : > { %1710 = vsyncadd (%p1446_p5), %s1106_s20, 4294967168  ;;  %p24_p7 = scmp.ge.s32.totalorder %s1857_s24, 4   ;;  %s2094_s30 = smov %s1717_s10 }
 0x394   : > { %s2095_s10 = smov %s1721_s11  ;;  %s2096_s11 = smov %s1871_s17 }
 0x395   : > { %s2097_s12 = smov %s1857_s24  ;;  %26 = sbr.rel (!%p24_p7) target bundleno = 11 (0xb), region = 119 }
 0x39a   :  { %1112 = vsyncpa [#allocation3], 1 }
 0x39b   :  { %1114 = vsyncpa [#allocation3 + $0x1], 1 }
 0x39c   :  { %1115 = vsyncpa [#allocation6], 1 }
 0x39d   :  { %1116 = vsyncpa [#allocation9], 1 }
 0x39e   :  { %1117 = vsyncpa [#allocation4], 1 }
 0x39f   :  { %1119 = vsyncpa [#allocation4 + $0x1], 1 }

</bundles_post_ra>
